<compile_context>
chip_gen: v5e
topology: v5e:2x2
jax: 0.10.0
libtpu: 0.0.40
codegen_flags: <defaults>
</compile_context>

<pallas_src>
import jax
import jax.numpy as jnp
from jax import lax
from jax.experimental import pallas as pl
from jax.experimental.pallas import tpu as pltpu

LANE = 128
NUM_CLASSES = 3              # fixed by mask2rgb / default weights
MAX_TILE_ROWS = 4096         # 4096x128 rows: ~16 MiB f32 double-buffered working set
VMEM_LIMIT_BYTES = 32 * 1024 * 1024   # explicit scoped-VMEM budget, valid on v5e/v6e/v7x


def _make_kernel(t_rows, hw, needs_tail_mask):
    """Build the per-(batch, spatial-tile) partial-sum kernel.

    x_ref : (C, t_rows, 128) logits (native dtype)
    t_ref : (t_rows, 128)    int class ids
    o_ref : (6, 128) f32     rows 0..2 = per-class intersection partials,
                             rows 3..5 = per-class cardinality partials
                             (resident across the spatial grid axis -> accumulator)
    """

    def kernel(x_ref, t_ref, o_ref):
        s = pl.program_id(1)
        ns = pl.num_programs(1)

        @pl.when(s == 0)
        def _init():
            o_ref[...] = jnp.zeros_like(o_ref)

        def accumulate(valid):
            # ---- unrolled C=3 softmax on full (t_rows, 128) vregs ----
            x0, x1, x2 = x_ref[0], x_ref[1], x_ref[2]
            m = jnp.maximum(jnp.maximum(x0, x1), x2)         # native dtype (bf16 stays packed)
            e0 = jnp.exp((x0 - m).astype(jnp.float32))
            e1 = jnp.exp((x1 - m).astype(jnp.float32))
            e2 = jnp.exp((x2 - m).astype(jnp.float32))
            denom = e0 + e1 + e2
            inv = pl.reciprocal(denom, approx=True)           # EUP slot (co-issues w/ VPU)
            inv = inv * (2.0 - denom * inv)                   # one Newton step -> ~f32-exact
            softs = (e0 * inv, e1 * inv, e2 * inv)

            t = t_ref[...]
            zeros = jnp.zeros_like(softs[0])
            inter_parts, card_parts = [], []
            for c in range(NUM_CLASSES):                      # static unroll, C = 3
                is_c = t == c
                soft_c = softs[c]
                if valid is not None:                         # tail tile only
                    is_c = jnp.logical_and(is_c, valid)
                    soft_c = jnp.where(valid, soft_c, zeros)
                onehot = is_c.astype(jnp.float32)
                inter_parts.append(
                    jnp.sum(jnp.where(is_c, softs[c], zeros), axis=0, keepdims=True))
                card_parts.append(
                    jnp.sum(soft_c + onehot, axis=0, keepdims=True))

            # one coalesced (6,128) add+store instead of six (1,128) RMWs
            stacked = jnp.concatenate(inter_parts + card_parts, axis=0)
            o_ref[...] = o_ref[...] + stacked

        if not needs_tail_mask:
            accumulate(None)
        else:
            @pl.when(s < ns - 1)
            def _steady():
                accumulate(None)

            @pl.when(s == ns - 1)
            def _tail():
                row = lax.broadcasted_iota(jnp.int32, (t_rows, LANE), 0)
                lane = lax.broadcasted_iota(jnp.int32, (t_rows, LANE), 1)
                pix = (s * t_rows + row) * LANE + lane
                accumulate(pix < hw)

    return kernel


def dice_loss(inputs, targets, weights):
    """inputs: (B, C, H, W) float logits; targets: (B, H, W) int; weights: (1, C)."""
    B, C, H, W = inputs.shape
    assert C == NUM_CLASSES, "DiceLoss is defined for 3 classes (mask2rgb)"
    HW = H * W
    eps = 1e-6

    hw128 = pl.cdiv(HW, LANE) * LANE
    x = inputs.reshape(B, C, HW)          # native dtype over HBM (bf16 stays bf16)
    t = targets.reshape(B, HW)            # int32 read directly (no standalone cast op)
    if hw128 != HW:
        # Only pad to the next lane multiple (required for a free (rows,128) view);
        # tile-multiple padding is handled in-kernel via the ragged-tail mask.
        x = jnp.pad(x, ((0, 0), (0, 0), (0, hw128 - HW)))
        t = jnp.pad(t, ((0, 0), (0, hw128 - HW)), constant_values=-1)
    rows = hw128 // LANE
    x = x.reshape(B, C, rows, LANE)
    t = t.reshape(B, rows, LANE)

    t_rows = min(rows, MAX_TILE_ROWS)
    n_spatial = pl.cdiv(rows, t_rows)
    needs_tail_mask = (rows % t_rows != 0) or (hw128 != HW)

    kernel = _make_kernel(t_rows, HW, needs_tail_mask)

    partials = pl.pallas_call(
        kernel,
        out_shape=jax.ShapeDtypeStruct((B, 2 * NUM_CLASSES, LANE), jnp.float32),
        grid_spec=pltpu.PrefetchScalarGridSpec(
            num_scalar_prefetch=0,
            grid=(B, n_spatial),
            in_specs=[
                pl.BlockSpec((None, C, t_rows, LANE), lambda b, s: (b, 0, s, 0)),
                pl.BlockSpec((None, t_rows, LANE), lambda b, s: (b, s, 0)),
            ],
            out_specs=pl.BlockSpec((None, 2 * NUM_CLASSES, LANE),
                                   lambda b, s: (b, 0, 0)),
        ),
        compiler_params=pltpu.CompilerParams(
            dimension_semantics=("parallel", "arbitrary"),
            vmem_limit_bytes=VMEM_LIMIT_BYTES),
    )(x, t)

    # tiny finalization in XLA: per-class dice, weighting, mean over batch
    inter = jnp.sum(partials[:, :NUM_CLASSES, :], axis=-1)     # (B, C)
    card = jnp.sum(partials[:, NUM_CLASSES:, :], axis=-1)      # (B, C)
    dice = 2.0 * inter / (card + eps)
    w = weights.reshape(1, NUM_CLASSES).astype(jnp.float32)
    return jnp.mean(1.0 - jnp.sum(dice * w, axis=1))


def dice_loss_ref(inputs, targets, weights):
    """Pure-JAX reference of the intended DiceLoss forward semantics."""
    soft = jax.nn.softmax(inputs.astype(jnp.float32), axis=1)
    onehot = jax.nn.one_hot(targets, inputs.shape[1], axis=1, dtype=jnp.float32)
    inter = jnp.sum(soft * onehot, axis=(2, 3))
    card = jnp.sum(soft + onehot, axis=(2, 3))
    dice = 2.0 * inter / (card + 1e-6)
    dice = jnp.sum(dice * weights.reshape(1, -1).astype(jnp.float32), axis=1)
    return jnp.mean(1.0 - dice)


if __name__ == "__main__":
    key = jax.random.PRNGKey(0)
    weights = jnp.array([[0.4, 0.55, 0.05]], dtype=jnp.float32)  # DiceLoss defaults

    # Case 1: H*W is a lane multiple -> zero host-side copies, unmasked fast path.
    B, C, H, W = 2, 3, 16, 16
    k_x, k_t, key = jax.random.split(key, 3)
    inputs = jax.random.normal(k_x, (B, C, H, W), dtype=jnp.float32)
    targets = jax.random.randint(k_t, (B, H, W), 0, C, dtype=jnp.int32)
    loss = jax.block_until_ready(dice_loss(inputs, targets, weights))
    ref = dice_loss_ref(inputs, targets, weights)
    assert jnp.allclose(loss, ref, atol=1e-4, rtol=1e-4), (loss, ref)

    # Case 2: H*W not a lane multiple -> exercises the in-kernel ragged-tail mask.
    B2, H2, W2 = 2, 20, 20
    k_x2, k_t2, key = jax.random.split(key, 3)
    inputs2 = jax.random.normal(k_x2, (B2, C, H2, W2), dtype=jnp.float32)
    targets2 = jax.random.randint(k_t2, (B2, H2, W2), 0, C, dtype=jnp.int32)
    loss2 = jax.block_until_ready(dice_loss(inputs2, targets2, weights))
    ref2 = dice_loss_ref(inputs2, targets2, weights)
    assert jnp.allclose(loss2, ref2, atol=1e-4, rtol=1e-4), (loss2, ref2)

    print("KERNEL_OK")
</pallas_src>

<mosaic_0001>
module attributes {stable_mosaic.version = 11 : i64} {
  func.func @kernel(%arg0: i32, %arg1: i32, %arg2: memref<1x3x2x128xf32, #tpu.memory_space<vmem>>, %arg3: memref<1x2x128xi32, #tpu.memory_space<vmem>>, %arg4: memref<1x6x128xf32, #tpu.memory_space<vmem>>) attributes {dimension_semantics = [#tpu.dimension_semantics<parallel>, #tpu.dimension_semantics<arbitrary>], iteration_bounds = array<i64: 2, 1>, scalar_prefetch = 0 : i64, scratch_operands = 0 : i64, tpu.core_type = #tpu.core_type<tc>, window_params = [{transform_indices = @transform_0, window_bounds = array<i64: 1, 3, 2, 128>}, {transform_indices = @transform_1, window_bounds = array<i64: 1, 2, 128>}, {transform_indices = @transform_2, window_bounds = array<i64: 1, 6, 128>}]} {
    %c0_i32 = arith.constant 0 : i32
    %0 = arith.cmpi eq, %arg1, %c0_i32 : i32
    %1 = arith.extui %0 : i1 to i32
    %c0_i32_0 = arith.constant 0 : i32
    %2 = arith.cmpi ne, %1, %c0_i32_0 : i32
    scf.if %2 {
      %cst_27 = arith.constant 0.000000e+00 : f32
      %67 = vector.broadcast %cst_27 : f32 to vector<6x128xf32>
      %c0_28 = arith.constant 0 : index
      %c0_29 = arith.constant 0 : index
      %c0_30 = arith.constant 0 : index
      %68 = vector.load %arg4[%c0_28, %c0_29, %c0_30] : memref<1x6x128xf32, #tpu.memory_space<vmem>>, vector<1x6x128xf32>
      %69 = vector.shape_cast %68 : vector<1x6x128xf32> to vector<6x128xf32>
      %70 = vector.shape_cast %67 : vector<6x128xf32> to vector<1x6x128xf32>
      tpu.vector_store %arg4[%c0_28, %c0_29, %c0_30], %70 {strides = array<i32>} : memref<1x6x128xf32, #tpu.memory_space<vmem>>, vector<1x6x128xf32>,
    } else {
    }
    %c0 = arith.constant 0 : index
    %c0_1 = arith.constant 0 : index
    %c0_2 = arith.constant 0 : index
    %c0_3 = arith.constant 0 : index
    %3 = vector.load %arg2[%c0, %c0_1, %c0_2, %c0_3] : memref<1x3x2x128xf32, #tpu.memory_space<vmem>>, vector<1x1x2x128xf32>
    %4 = vector.shape_cast %3 : vector<1x1x2x128xf32> to vector<2x128xf32>
    %c0_4 = arith.constant 0 : index
    %c1 = arith.constant 1 : index
    %c0_5 = arith.constant 0 : index
    %c0_6 = arith.constant 0 : index
    %5 = vector.load %arg2[%c0_4, %c1, %c0_5, %c0_6] : memref<1x3x2x128xf32, #tpu.memory_space<vmem>>, vector<1x1x2x128xf32>
    %6 = vector.shape_cast %5 : vector<1x1x2x128xf32> to vector<2x128xf32>
    %c0_7 = arith.constant 0 : index
    %c2 = arith.constant 2 : index
    %c0_8 = arith.constant 0 : index
    %c0_9 = arith.constant 0 : index
    %7 = vector.load %arg2[%c0_7, %c2, %c0_8, %c0_9] : memref<1x3x2x128xf32, #tpu.memory_space<vmem>>, vector<1x1x2x128xf32>
    %8 = vector.shape_cast %7 : vector<1x1x2x128xf32> to vector<2x128xf32>
    %9 = arith.maximumf %4, %6 : vector<2x128xf32>
    %10 = arith.maximumf %9, %8 : vector<2x128xf32>
    %11 = arith.subf %4, %10 : vector<2x128xf32>
    %12 = math.exp %11 : vector<2x128xf32>
    %13 = arith.subf %6, %10 : vector<2x128xf32>
    %14 = math.exp %13 : vector<2x128xf32>
    %15 = arith.subf %8, %10 : vector<2x128xf32>
    %16 = math.exp %15 : vector<2x128xf32>
    %17 = arith.addf %12, %14 : vector<2x128xf32>
    %18 = arith.addf %17, %16 : vector<2x128xf32>
    %19 = tpu.reciprocal %18 {approx = true} : vector<2x128xf32> -> vector<2x128xf32>
    %20 = arith.mulf %18, %19 : vector<2x128xf32>
    %cst = arith.constant 2.000000e+00 : f32
    %21 = vector.broadcast %cst : f32 to vector<2x128xf32>
    %22 = arith.subf %21, %20 : vector<2x128xf32>
    %23 = arith.mulf %19, %22 : vector<2x128xf32>
    %24 = arith.mulf %12, %23 : vector<2x128xf32>
    %25 = arith.mulf %14, %23 : vector<2x128xf32>
    %26 = arith.mulf %16, %23 : vector<2x128xf32>
    %c0_10 = arith.constant 0 : index
    %c0_11 = arith.constant 0 : index
    %c0_12 = arith.constant 0 : index
    %27 = vector.load %arg3[%c0_10, %c0_11, %c0_12] : memref<1x2x128xi32, #tpu.memory_space<vmem>>, vector<1x2x128xi32>
    %28 = vector.shape_cast %27 : vector<1x2x128xi32> to vector<2x128xi32>
    %cst_13 = arith.constant 0.000000e+00 : f32
    %29 = vector.broadcast %cst_13 : f32 to vector<2x128xf32>
    %c0_i32_14 = arith.constant 0 : i32
    %30 = vector.broadcast %c0_i32_14 : i32 to vector<2x128xi32>
    %31 = arith.cmpi eq, %28, %30 : vector<2x128xi32>
    %32 = arith.extui %31 : vector<2x128xi1> to vector<2x128xi32>
    %33 = arith.sitofp %32 : vector<2x128xi32> to vector<2x128xf32>
    %34 = arith.select %31, %24, %29 : vector<2x128xi1>, vector<2x128xf32>
    %cst_15 = arith.constant dense<0.000000e+00> : vector<128xf32>
    %35 = vector.multi_reduction <add>, %34, %cst_15 [0] : vector<2x128xf32> to vector<128xf32>
    %36 = vector.shape_cast %35 : vector<128xf32> to vector<1x128xf32>
    %37 = arith.addf %24, %33 : vector<2x128xf32>
    %cst_16 = arith.constant dense<0.000000e+00> : vector<128xf32>
    %38 = vector.multi_reduction <add>, %37, %cst_16 [0] : vector<2x128xf32> to vector<128xf32>
    %39 = vector.shape_cast %38 : vector<128xf32> to vector<1x128xf32>
    %c1_i32 = arith.constant 1 : i32
    %40 = vector.broadcast %c1_i32 : i32 to vector<2x128xi32>
    %41 = arith.cmpi eq, %28, %40 : vector<2x128xi32>
    %42 = arith.extui %41 : vector<2x128xi1> to vector<2x128xi32>
    %43 = arith.sitofp %42 : vector<2x128xi32> to vector<2x128xf32>
    %44 = arith.select %41, %25, %29 : vector<2x128xi1>, vector<2x128xf32>
    %cst_17 = arith.constant dense<0.000000e+00> : vector<128xf32>
    %45 = vector.multi_reduction <add>, %44, %cst_17 [0] : vector<2x128xf32> to vector<128xf32>
    %46 = vector.shape_cast %45 : vector<128xf32> to vector<1x128xf32>
    %47 = arith.addf %25, %43 : vector<2x128xf32>
    %cst_18 = arith.constant dense<0.000000e+00> : vector<128xf32>
    %48 = vector.multi_reduction <add>, %47, %cst_18 [0] : vector<2x128xf32> to vector<128xf32>
    %49 = vector.shape_cast %48 : vector<128xf32> to vector<1x128xf32>
    %c2_i32 = arith.constant 2 : i32
    %50 = vector.broadcast %c2_i32 : i32 to vector<2x128xi32>
    %51 = arith.cmpi eq, %28, %50 : vector<2x128xi32>
    %52 = arith.extui %51 : vector<2x128xi1> to vector<2x128xi32>
    %53 = arith.sitofp %52 : vector<2x128xi32> to vector<2x128xf32>
    %54 = arith.select %51, %26, %29 : vector<2x128xi1>, vector<2x128xf32>
    %cst_19 = arith.constant dense<0.000000e+00> : vector<128xf32>
    %55 = vector.multi_reduction <add>, %54, %cst_19 [0] : vector<2x128xf32> to vector<128xf32>
    %56 = vector.shape_cast %55 : vector<128xf32> to vector<1x128xf32>
    %57 = arith.addf %26, %53 : vector<2x128xf32>
    %cst_20 = arith.constant dense<0.000000e+00> : vector<128xf32>
    %58 = vector.multi_reduction <add>, %57, %cst_20 [0] : vector<2x128xf32> to vector<128xf32>
    %59 = vector.shape_cast %58 : vector<128xf32> to vector<1x128xf32>
    %60 = tpu.concatenate %36, %46, %56, %39, %49, %59 in 0 : vector<1x128xf32>, vector<1x128xf32>, vector<1x128xf32>, vector<1x128xf32>, vector<1x128xf32>, vector<1x128xf32> -> vector<6x128xf32>
    %c0_21 = arith.constant 0 : index
    %c0_22 = arith.constant 0 : index
    %c0_23 = arith.constant 0 : index
    %61 = vector.load %arg4[%c0_21, %c0_22, %c0_23] : memref<1x6x128xf32, #tpu.memory_space<vmem>>, vector<1x6x128xf32>
    %62 = vector.shape_cast %61 : vector<1x6x128xf32> to vector<6x128xf32>
    %63 = arith.addf %62, %60 : vector<6x128xf32>
    %c0_24 = arith.constant 0 : index
    %c0_25 = arith.constant 0 : index
    %c0_26 = arith.constant 0 : index
    %64 = vector.load %arg4[%c0_24, %c0_25, %c0_26] : memref<1x6x128xf32, #tpu.memory_space<vmem>>, vector<1x6x128xf32>
    %65 = vector.shape_cast %64 : vector<1x6x128xf32> to vector<6x128xf32>
    %66 = vector.shape_cast %63 : vector<6x128xf32> to vector<1x6x128xf32>
    tpu.vector_store %arg4[%c0_24, %c0_25, %c0_26], %66 {strides = array<i32>} : memref<1x6x128xf32, #tpu.memory_space<vmem>>, vector<1x6x128xf32>,
    return
  }
  func.func @transform_0(%arg0: i32, %arg1: i32) -> (i32, i32, i32, i32) {
    %c0_i32 = arith.constant 0 : i32
    %c0_i32_0 = arith.constant 0 : i32
    %c0_i32_1 = arith.constant 0 : i32
    return %arg0, %c0_i32, %arg1, %c0_i32_0 : i32, i32, i32, i32
  }
  func.func @transform_1(%arg0: i32, %arg1: i32) -> (i32, i32, i32) {
    %c0_i32 = arith.constant 0 : i32
    %c0_i32_0 = arith.constant 0 : i32
    return %arg0, %arg1, %c0_i32 : i32, i32, i32
  }
  func.func @transform_2(%arg0: i32, %arg1: i32) -> (i32, i32, i32) {
    %c0_i32 = arith.constant 0 : i32
    %c0_i32_0 = arith.constant 0 : i32
    %c0_i32_1 = arith.constant 0 : i32
    return %arg0, %c0_i32, %c0_i32_0 : i32, i32, i32
  }
}

</mosaic_0001>

<bundles_post_ra>
// kernel: tpu_custom_call.1
= control target key start
LH: loop header
LB: loop body
LE: loop exit
PB: predicated region body
PF: predicated region fallthrough
CT: control target
= control target key end

     0   :  { %7 = vsyncpa [#allocation3], 0  ;;  %s756_s0 = inlined_call_operand.hbm [shape: f32[2,3,2,128], index: 0, kind: input, shape index: {}]   ;;  %s757_s1 = inlined_call_operand.hbm [shape: s32[2,2,128], index: 1, kind: input, shape index: {}]   ;;  %s758_s2 = inlined_call_operand.vmem [shape: f32[2,6,128], index: 2, kind: output, shape index: {}]  }
   0x1   :  { %9 = vsyncpa [#allocation3 + $0x1], 0 }
   0x2   :  { %10 = vsyncpa [#allocation5], 0 }
   0x3   :  { %12 = vsyncpa [#allocation5 + $0x1], 0  ;;  %s646_s9 = smov 0   ;;  %s648_s10 = smov 0  }
   0x4   :  { %s650_s11 = smov 0   ;;  %s652_s12 = smov 0  }
   0x5   :  { %s654_s13 = smov 0   ;;  %s656_s14 = smov 0  }
   0x6 LB: > { %s421_s15 = sadd.s32 4294967295, %s626_s14   ;;  %s30_s16 = sadd.s32 1, %s622_s13  ;;  %s626_s14 = sphi %s656_s14, %s18_s14   ;;  %s622_s13 = sphi %s654_s13, %s765_s13   ;;  %s618_s12 = sphi %s652_s12, %s764_s12   ;;  %s614_s11 = sphi %s650_s11, %s763_s11   ;;  %s610_s10 = sphi %s648_s10, %s762_s10   ;;  %s606_s9 = sphi %s646_s9, %s761_s9  }
   0x7   : > { %p32_p0 = scmp.ge.s32.totalorder %s30_s16, 2  ;;  %s39_s17 = sadd.s32 1, %s614_s11 }
   0x8   : > { %p46_p1 = scmp.ne.s32.totalorder %s614_s11, %s610_s10  ;;  %p47_p2 = scmp.eq.s32.totalorder %s626_s14, 0 }
   0x9   : > { %s767_s16 = smov (%p32_p0, %s30_s16), 0  ;;  %p52_p4 = scmp.ne.s32.totalorder %s610_s10, %s606_s9 }
   0xa   : > { %p48_p3 = por %p47_p2, %p46_p1  ;;  %s34_s18 = ssub.s32 %s622_s13, %s767_s16 }
   0xb   : > { %p53_p5 = scmp.eq.s32.totalorder %s421_s15, 0  ;;  %p37_p6 = scmp.eq.s32.totalorder %s34_s18, 0 }
   0xc   : > { %p452_p8 = scmp.lt.s32.totalorder %s626_s14, 2  ;;  %s130_s21 = sand.u32 1, %s614_s11  }
   0xd   : > { %p685_p7 = por %p53_p5, %p52_p4  ;;  %s439_s22 = smul.u32 6, %s622_s13 }
   0xe   : > { %s691_s20 = scalar_select %p37_p6, %s614_s11, %s39_s17  }
   0xf   : > { %s438_s23 = smul.u32 6, %s130_s21  ;;  %s140_s26 = scalar_lea.hbm %s756_s0, %s439_s22 }
  0x10   : > { %p698_p9 = pnand %p452_p8, %p48_p3  ;;  %s141_s28 = sshll.u32 %s140_s26, 4  ;;  %s142_s28 = int_to_ptr.hbm [resolvable:$true] %s141_s28 }
  0x11   : > { %s134_s29 = scalar_lea.vmem [#allocation2], %s438_s23  ;;  %s131_s3 = scalar_lea.sflag [#allocation3], %s130_s21 }
  0x12   : > { %s143_s30 = sshll.u32 %s134_s29, 4  ;;  %s628_s4 = smov 32   ;;  %s144_s30 = int_to_ptr.vmem [resolvable:$true] %s143_s30 }
  0x13   : > { %s629_s5 = smov 2   ;;  %p428_p10 = scmp.ge.s32.totalorder %s626_s14, 1 }
  0x14   : > { %448 = dma.hbm_to_vmem [thread:$0]  (!%p698_p9), %s142_s28, 96, %s144_s30, %s131_s3, %s628_s4, %s628_s4, %s629_s5  }
  0x15   : > { %p171_p11 = scmp.lt.s32.totalorder %s626_s14, 3  ;;  %s426_s6 = sshll.u32 %s130_s21, 1 }
  0x16   : > { %s427_s7 = sshll.u32 %s622_s13, 1  ;;  %s157_s8 = scalar_lea.vmem [#allocation4], %s426_s6 }
  0x17   : > { %p172_p12 = pnand %p428_p10, %p171_p11  ;;  %s166_s9 = sshll.u32 %s157_s8, 4  ;;  %s167_s9 = int_to_ptr.vmem [resolvable:$true] %s166_s9 }
  0x18   : > { %s162_s18 = scalar_lea.hbm %s757_s1, %s427_s7  ;;  %s154_s23 = scalar_lea.sflag [#allocation5], %s130_s21 }
  0x19   : > { %s164_s22 = sshll.u32 %s162_s18, 4  ;;  %175 = sbr.rel (%p172_p12) target bundleno = 95 (0x5f), region = 28  ;;  %s165_s22 = int_to_ptr.hbm [resolvable:$true] %s164_s22 }
  0x1a   : > { %451 = dma.hbm_to_vmem [thread:$0]  (!%p698_p9), %s165_s22, 32, %s167_s9, %s154_s23  }
  0x1b   : > { %s177_s24 = sand.u32 (!%p172_p12), 1, %s610_s10  }
  0x1c   : > { %s440_s25 = smul.u32 (!%p172_p12), 6, %s177_s24  ;;  %s178_s26 = scalar_lea.sflag (!%p172_p12), [#allocation3], %s177_s24 }
  0x1e   : > { %s181_s28 = scalar_lea.vmem [#allocation2], %s440_s25 }
  0x1f   : > { %597 = dma.done.wait (%p685_p7), %s178_s26, 96  }
  0x20   : > { %599 = vsyncadd (%p685_p7), %s178_s26, 4294967200  ;;  %s429_s29 = sshll.u32 %s177_s24, 1  ;;  %s188_s30 = scalar_lea.sflag [#allocation5], %s177_s24 }
  0x21   : > { %s191_s3 = scalar_lea.vmem [#allocation4], %s429_s29 }
  0x22   : > { %601 = dma.done.wait (%p685_p7), %s188_s30, 32  }
  0x23   : > { %603 = vsyncadd (%p685_p7), %s188_s30, 4294967264  ;;  %p217_p13 = scmp.lt.s32.totalorder %s618_s12, 1  ;;  %v630_v0 = vmov 0.0   ;;  %v226_v1 = vld [vmem:[%s181_s28] sm:$0x3]  ;;  %vm256_vm3 = vcmask 1041408  }
  0x24   : > { %v431_v2 = vld [vmem:[%s181_s28 + $0x2] sm:$0x3]  ;;  %v432_v3 = vld [vmem:[%s181_s28 + $0x4] sm:$0x3]  ;;  %v251_v18 = vld [vmem:[%s191_s3] sm:$0x3] }
  0x25   : > { %s769_s12 = smov (!%p217_p13, %s618_s12), 1  ;;  %v231_v4 = vmax.f32 %v226_v1, %v431_v2  ;;  %vm252_vm0 = vcmp.eq.s32.totalorder %v251_v18, 0  ;;  %vm272_vm1 = vcmp.eq.s32.totalorder %v251_v18, 1  ;;  %vm291_vm2 = vcmp.eq.s32.totalorder %v251_v18, 2 }
  0x26   : > { %s430_s21 = sshll.u32 %s769_s12, 3  ;;  %v433_v22 = vsel %vm252_vm0, 1.0, %v630_v0  ;;  %v434_v23 = vsel %vm272_vm1, 1.0, %v630_v0  ;;  %v435_v27 = vsel %vm291_vm2, 1.0, %v630_v0  ;;  %vm310_vm4 = vcmask 1040384  }
  0x27   : > { %s726_s5 = scalar_lea.vmem %s758_s2, %s430_s21  ;;  %v232_v5 = vmax.f32 %v231_v4, %v432_v3  ;;  %vm313_vm5 = vcmask 1042432   ;;  %vm315_vm6 = vcmask 1043456   ;;  %vm317_vm7 = vcmask 1044480  }
  0x28   : > { %225 = vst [vmem:[%s726_s5] sm:$0x3f] %v630_v0 }
  0x29   : > { %v233_v6 = vsub.f32 %v226_v1, %v232_v5  ;;  %v236_v7 = vsub.f32 %v431_v2, %v232_v5  ;;  %v239_v8 = vsub.f32 %v432_v3, %v232_v5 }
  0x2b   : > { %v234_v9 = vmul.f32 1.442695, %v233_v6  ;;  %v237_v10 = vmul.f32 1.442695, %v236_v7  ;;  %v240_v11 = vmul.f32 1.442695, %v239_v8 }
  0x2d   : > { %504 = vpow2.f32 %v234_v9 }
  0x2e   : > { %506 = vpow2.f32 %v237_v10 }
  0x2f   : > { %508 = vpow2.f32 %v240_v11 }
  0x33   : > { %v505_v12 = vpop.eup %504 }
  0x34   : > { %v507_v13 = vpop.eup %506 }
  0x35   : > { %v509_v14 = vpop.eup %508  ;;  %v242_v15 = vadd.f32 %v507_v13, %v505_v12 }
  0x37   : > { %v243_v16 = vadd.f32 %v509_v14, %v242_v15  ;;  %v319_v15 = vld [vmem:[%s726_s5] sm:$0x3f] }
  0x39   : > { %510 = vrcp.f32 %v243_v16 }
  0x3f   : > { %v511_v17 = vpop.eup %510 }
  0x40   : > { %v245_v19 = vmul.f32 %v511_v17, %v243_v16 }
  0x42   : > { %v246_v20 = vsub.f32 2.0, %v245_v19 }
  0x44   : > { %v247_v21 = vmul.f32 %v511_v17, %v246_v20 }
  0x46   : > { %v248_v24 = vmul.f32 %v505_v12, %v247_v21  ;;  %v249_v25 = vmul.f32 %v507_v13, %v247_v21  ;;  %v250_v26 = vmul.f32 %v509_v14, %v247_v21 }
  0x48   : > { %v255_v28 = vsel %vm252_vm0, %v248_v24, 0.0  ;;  %v264_v29 = vadd.f32 %v433_v22, %v248_v24  ;;  %v275_v30 = vsel %vm272_vm1, %v249_v25, 0.0  ;;  %v283_v31 = vadd.f32 %v434_v23, %v249_v25 }
  0x49   : > { %v257_v32 = vsel %vm256_vm3, %v255_v28, 0.0  ;;  %v276_v33 = vsel %vm256_vm3, %v275_v30, 0.0  ;;  %v294_v34 = vsel %vm291_vm2, %v250_v26, 0.0  ;;  %v302_v35 = vadd.f32 %v435_v27, %v250_v26 }
  0x4a   : > { %v258_v36 = vrot.slane %v257_v32, 4  ;;  %v265_v37 = vsel %vm256_vm3, %v264_v29, 0.0  ;;  %v277_v38 = vrot.slane %v276_v33, 4  ;;  %v284_v39 = vsel %vm256_vm3, %v283_v31, 0.0 }
  0x4b   : > { %v266_v40 = vrot.slane %v265_v37, 4  ;;  %v285_v41 = vrot.slane %v284_v39, 4  ;;  %v295_v42 = vsel %vm256_vm3, %v294_v34, 0.0  ;;  %v303_v43 = vsel %vm256_vm3, %v302_v35, 0.0 }
  0x4c   : > { %v259_v44 = vadd.f32 %v258_v36, %v257_v32  ;;  %v278_v45 = vadd.f32 %v277_v38, %v276_v33  ;;  %v296_v46 = vrot.slane %v295_v42, 4  ;;  %v304_v47 = vrot.slane %v303_v43, 4 }
  0x4d   : > { %v267_v48 = vadd.f32 %v266_v40, %v265_v37  ;;  %v286_v49 = vadd.f32 %v285_v41, %v284_v39 }
  0x4e   : > { %v260_v50 = vrot.slane %v259_v44, 2  ;;  %v279_v51 = vrot.slane %v278_v45, 2  ;;  %v297_v52 = vadd.f32 %v296_v46, %v295_v42  ;;  %v305_v53 = vadd.f32 %v304_v47, %v303_v43 }
  0x4f   : > { %v268_v54 = vrot.slane %v267_v48, 2  ;;  %v287_v55 = vrot.slane %v286_v49, 2 }
  0x50   : > { %v261_v56 = vadd.f32 %v260_v50, %v259_v44  ;;  %v280_v57 = vadd.f32 %v279_v51, %v278_v45  ;;  %v298_v58 = vrot.slane %v297_v52, 2  ;;  %v306_v59 = vrot.slane %v305_v53, 2 }
  0x51   : > { %v269_v60 = vadd.f32 %v268_v54, %v267_v48  ;;  %v288_v61 = vadd.f32 %v287_v55, %v286_v49 }
  0x52   : > { %v262_v62 = vrot.slane %v261_v56, 1  ;;  %v281_v63 = vrot.slane %v280_v57, 1  ;;  %v299_v0 = vadd.f32 %v298_v58, %v297_v52  ;;  %v307_v1 = vadd.f32 %v306_v59, %v305_v53 }
  0x53   : > { %v270_v2 = vrot.slane %v269_v60, 1  ;;  %v289_v3 = vrot.slane %v288_v61, 1 }
  0x54   : > { %v263_v4 = vadd.f32 %v262_v62, %v261_v56  ;;  %v282_v5 = vadd.f32 %v281_v63, %v280_v57  ;;  %v300_v6 = vrot.slane %v299_v0, 1  ;;  %v308_v7 = vrot.slane %v307_v1, 1 }
  0x55   : > { %v271_v8 = vadd.f32 %v270_v2, %v269_v60  ;;  %v290_v9 = vadd.f32 %v289_v3, %v288_v61 }
  0x56   : > { %v301_v10 = vadd.f32 %v300_v6, %v299_v0  ;;  %v311_v11 = vsel %vm310_vm4, %v263_v4, %v282_v5  ;;  %v309_v12 = vadd.f32 %v308_v7, %v307_v1 }
  0x58   : > { %v312_v13 = vsel %vm256_vm3, %v311_v11, %v301_v10 }
  0x59   : > { %v314_v14 = vsel %vm313_vm5, %v312_v13, %v271_v8 }
  0x5a   : > { %v316_v16 = vsel %vm315_vm6, %v314_v14, %v290_v9 }
  0x5b   : > { %v318_v17 = vsel %vm317_vm7, %v316_v16, %v309_v12 }
  0x5c   : > { %v320_v18 = vadd.f32 %v319_v15, %v318_v17 }
  0x5e   : > { %321 = vst [vmem:[%s726_s5] sm:$0x3f] %v320_v18 }
  0x5f PF: > { %s18_s14 = sadd.s32 1, %s626_s14   ;;  %s761_s9 = smov %s610_s10 }
  0x60   : > { %p15_p0 = scmp.ge.s32.totalorder %s18_s14, 4   ;;  %s762_s10 = smov %s614_s11 }
  0x61   : > { %s763_s11 = smov %s691_s20  ;;  %s764_s12 = smov %s622_s13 }
  0x62   : > { %s765_s13 = smov %s767_s16  ;;  %17 = sbr.rel (!%p15_p0) target bundleno = 6 (0x6), region = 87 }
  0x67   :  { %341 = vsyncpa [#allocation3], 1 }
  0x68   :  { %343 = vsyncpa [#allocation3 + $0x1], 1 }
  0x69   :  { %344 = vsyncpa [#allocation5], 1 }
  0x6a   :  { %346 = vsyncpa [#allocation5 + $0x1], 1 }

</bundles_post_ra>
